<compile_context>
chip_gen: v6e
topology: v6e:2x2x1
jax: 0.10.0
libtpu: 0.0.40
codegen_flags: <defaults>
</compile_context>

<pallas_src>
import functools

import jax
import jax.numpy as jnp
from jax.experimental import pallas as pl
from jax.experimental.pallas import tpu as pltpu


def _scaling_kernel(x_ref, scale_ref, y_ref, *, sign):
    # scale_ref: (1, D) in VMEM; x_ref / y_ref: (TB, D) in VMEM.
    e = jnp.exp(sign * scale_ref[...])                    # (1, D) — EUP, tiny
    y_ref[...] = (x_ref[...] * e).astype(y_ref.dtype)     # broadcast over rows


def _pick_batch_tile(B, D, itemsize, *, max_tile_bytes=2 << 20, max_rows=1024):
    """Pick a batch tile: full batch if small, else a multiple-of-8 row count
    bounded by ~2 MiB per buffer (v5e-safe with double buffering) and 1024 rows."""
    rows = max(1, max_tile_bytes // max(1, D * itemsize))
    rows = min(rows, max_rows)
    rows = max(8, (rows // 8) * 8)
    if B <= rows:
        return B          # single full-extent block (satisfies full-dim rule)
    return rows           # multiple of 8 -> satisfies (8, 128) tiling rule


def scaling_forward(x, scale, reverse: bool = False):
    """Pallas implementation of Scaling.forward.

    x:     (B, D)
    scale: (1, D)
    returns (y of shape (B, D), log_det_J scalar)
    """
    B, D = x.shape
    assert scale.shape == (1, D)
    sign = -1.0 if reverse else 1.0
    kernel = functools.partial(_scaling_kernel, sign=sign)

    tb = _pick_batch_tile(B, D, jnp.dtype(x.dtype).itemsize)
    grid = (pl.cdiv(B, tb),)

    y = pl.pallas_call(
        kernel,
        out_shape=jax.ShapeDtypeStruct((B, D), x.dtype),
        grid=grid,
        in_specs=[
            pl.BlockSpec((tb, D), lambda i: (i, 0)),     # batch tile of x
            pl.BlockSpec((1, D), lambda i: (0, 0)),      # scale, same every tile
        ],
        out_specs=pl.BlockSpec((tb, D), lambda i: (i, 0)),
        compiler_params=pltpu.CompilerParams(
            dimension_semantics=("parallel",),           # megacore-shardable
        ),
    )(x, scale)

    # log-det-Jacobian: tiny (1, D) reduction; cheaper in the wrapper than as a
    # redundant per-tile masked 1-lane store inside the kernel.
    log_det_j = jnp.sum(scale)
    return y, log_det_j


if __name__ == "__main__":
    key = jax.random.PRNGKey(0)
    kx, ks = jax.random.split(key)

    B, D = 8, 32
    x = jax.random.normal(kx, (B, D), dtype=jnp.float32)
    # Module __init__ uses zeros((1, dim)); use a small deterministic non-zero
    # scale here so the exp/broadcast path is actually exercised.
    scale = 0.1 * jax.random.normal(ks, (1, D), dtype=jnp.float32)

    # forward direction
    y, logdet = scaling_forward(x, scale, reverse=False)
    y = jax.block_until_ready(y)
    logdet = jax.block_until_ready(logdet)

    # reverse direction
    y_rev, logdet_rev = scaling_forward(x, scale, reverse=True)
    y_rev = jax.block_until_ready(y_rev)
    logdet_rev = jax.block_until_ready(logdet_rev)

    # pure-JAX reference check
    ref_y = x * jnp.exp(scale)
    ref_y_rev = x * jnp.exp(-scale)
    ref_logdet = jnp.sum(scale)
    assert jnp.allclose(y, ref_y, atol=1e-5, rtol=1e-5)
    assert jnp.allclose(y_rev, ref_y_rev, atol=1e-5, rtol=1e-5)
    assert jnp.allclose(logdet, ref_logdet, atol=1e-6)
    assert jnp.allclose(logdet_rev, ref_logdet, atol=1e-6)

    print("KERNEL_OK")
</pallas_src>

<mosaic_0001>
module attributes {stable_mosaic.version = 11 : i64} {
  func.func @_scaling_kernel(%arg0: i32, %arg1: memref<8x32xf32, #tpu.memory_space<vmem>>, %arg2: memref<1x32xf32, #tpu.memory_space<vmem>>, %arg3: memref<8x32xf32, #tpu.memory_space<vmem>>) attributes {dimension_semantics = [#tpu.dimension_semantics<parallel>], iteration_bounds = array<i64: 1>, scalar_prefetch = 0 : i64, scratch_operands = 0 : i64, tpu.core_type = #tpu.core_type<tc>, window_params = [{transform_indices = @transform_0, window_bounds = array<i64: 8, 32>}, {pipeline_mode = #tpu.pipeline_mode<synchronous>, transform_indices = @transform_1, window_bounds = array<i64: 1, 32>}, {transform_indices = @transform_2, window_bounds = array<i64: 8, 32>}]} {
    %c0 = arith.constant 0 : index
    %c0_0 = arith.constant 0 : index
    %0 = vector.load %arg2[%c0, %c0_0] : memref<1x32xf32, #tpu.memory_space<vmem>>, vector<1x32xf32>
    %cst = arith.constant 1.000000e+00 : f32
    %1 = vector.broadcast %cst : f32 to vector<1x32xf32>
    %2 = arith.mulf %1, %0 : vector<1x32xf32>
    %3 = math.exp %2 : vector<1x32xf32>
    %c0_1 = arith.constant 0 : index
    %c0_2 = arith.constant 0 : index
    %4 = vector.load %arg1[%c0_1, %c0_2] : memref<8x32xf32, #tpu.memory_space<vmem>>, vector<8x32xf32>
    %5 = vector.broadcast %3 : vector<1x32xf32> to vector<8x32xf32>
    %6 = arith.mulf %4, %5 : vector<8x32xf32>
    %c0_3 = arith.constant 0 : index
    %c0_4 = arith.constant 0 : index
    %7 = vector.load %arg3[%c0_3, %c0_4] : memref<8x32xf32, #tpu.memory_space<vmem>>, vector<8x32xf32>
    tpu.vector_store %arg3[%c0_3, %c0_4], %6 {strides = array<i32>} : memref<8x32xf32, #tpu.memory_space<vmem>>, vector<8x32xf32>,
    return
  }
  func.func @transform_0(%arg0: i32) -> (i32, i32) {
    %c0_i32 = arith.constant 0 : i32
    %c0_i32_0 = arith.constant 0 : i32
    return %arg0, %c0_i32 : i32, i32
  }
  func.func @transform_1(%arg0: i32) -> (i32, i32) {
    %c0_i32 = arith.constant 0 : i32
    %c0_i32_0 = arith.constant 0 : i32
    %c0_i32_1 = arith.constant 0 : i32
    return %c0_i32, %c0_i32_0 : i32, i32
  }
  func.func @transform_2(%arg0: i32) -> (i32, i32) {
    %c0_i32 = arith.constant 0 : i32
    %c0_i32_0 = arith.constant 0 : i32
    return %arg0, %c0_i32 : i32, i32
  }
}

</mosaic_0001>

<bundles_post_ra>
// kernel: tpu_custom_call.1
= control target key start
LH: loop header
LB: loop body
LE: loop exit
PB: predicated region body
PF: predicated region fallthrough
CT: control target
= control target key end

     0   :  { %7 = vsyncpa [#allocation3], 0  ;;  %s126_s0 = inlined_call_operand.hbm [shape: f32[8,32], index: 0, kind: input, shape index: {}]   ;;  %s127_s1 = inlined_call_operand.vmem [shape: f32[1,32], index: 1, kind: input, shape index: {}]   ;;  %s128_s2 = inlined_call_operand.hbm [shape: f32[8,32], index: 2, kind: output, shape index: {}]  }
   0x1   :  { %8 = vsyncpa [#allocation4], 0  ;;  %s100_s9 = smov [#allocation2]  }
   0x2   :  { %s15_s10 = sshll.u32 %s100_s9, 4  ;;  %s16_s10 = int_to_ptr.vmem [resolvable:$true] %s15_s10 }
   0x3   :  { %s64_s11 = scalar_lea.vmem %s16_s10, 128  ;;  %p69_p1 = scmp.lt.s32.totalorder %s16_s10, %s16_s10 }
   0x4   :  { %p65_p0 = scmp.ne.s32.totalorder %s16_s10, %s64_s11  ;;  %p70_p2 = scmp.lt.s32.totalorder %s64_s11, %s64_s11 }
   0x6   :  { %p71_p3 = por %p70_p2, %p69_p1 }
   0x8   :  { %p72_p4 = pnand %p71_p3, %p65_p0 }
   0xa   :  { %75 = shalt.err (!%p72_p4)
}
   0xb   :  { %18 = dma.hbm_to_vmem [thread:$0]  %s126_s0, 128, %s16_s10, [#allocation3]  }
   0xc   :  { %96 = dma.done.wait [#allocation3], 128  }
   0xd   :  { %97 = vsyncadd [#allocation3], 4294967168  ;;  %v24_v0 = vld [vmem:[%s127_s1] sm:$0x1]  ;;  %v29_v2 = vlaneseq  ;;  %s101_s16 = smov [#allocation5]   ;;  %vm35_vm0 = vcmask 261120  }
   0xe   :  { %v25_v1 = vmul.f32 1.442695, %v24_v0  ;;  %v27_v6 = vld [vmem:[#allocation2] sm:$0xff]  ;;  %s43_s17 = sshll.u32 %s101_s16, 4  ;;  %s44_s17 = int_to_ptr.vmem [resolvable:$true] %s43_s17 }
   0xf   :  { %v30_v3 = vshrl.u32 %v29_v2, 7  ;;  %s76_s0 = scalar_lea.vmem %s44_s17, 128  ;;  %p81_p6 = scmp.lt.s32.totalorder %s44_s17, %s44_s17 }
  0x10   :  { %54 = vpow2.f32 %v25_v1  ;;  %p77_p5 = scmp.ne.s32.totalorder %s44_s17, %s76_s0  ;;  %p82_p7 = scmp.lt.s32.totalorder %s76_s0, %s76_s0 }
  0x11   :  { %v31_v4 = vsub.s32 0, %v30_v3 }
  0x12   :  { %p83_p8 = por %p82_p7, %p81_p6 }
  0x14   :  { %p84_p9 = pnand %p83_p8, %p77_p5 }
  0x1d   :  { %v55_v5 = vpop.eup %54 }
  0x1e   :  { %v32_v7 = vrot.slane %v55_v5, %v31_v4 }
  0x20   :  { %v34_v8 = vmul.f32 %v32_v7, %v27_v6 }
  0x22   :  { %36 = vst.msk [vmem:[#allocation5] sm:$0xff] %vm35_vm0, %v34_v8 }
  0x23   :  { %87 = shalt.err (!%p84_p9)
}
  0x24   :  { %46 = dma.vmem_to_hbm [thread:$0]  %s44_s17, 128, %s128_s2, [#allocation4]  }
  0x25   :  { %98 = dma.done.wait [#allocation4], 128  }
  0x26   :  { %99 = vsyncadd [#allocation4], 4294967168 }
  0x27   :  { %50 = vsyncpa [#allocation3], 1 }
  0x28   :  { %51 = vsyncpa [#allocation4], 1 }

</bundles_post_ra>
